<compile_context>
chip_gen: v7x
topology: tpu7x:2x2x1
jax: 0.10.0
libtpu: 0.0.40
codegen_flags: <defaults>
</compile_context>

<pallas_src>
import functools

import jax
import jax.numpy as jnp
from jax.experimental import pallas as pl
from jax.experimental.pallas import tpu as pltpu


# ----------------------------------------------------------------------------
# Pallas kernel: fused 1x1-conv (as W @ X, spatial on lanes) + bias + ReLU.
# BN scale is pre-folded into the weights; bias = beta - mean * scale.
# ----------------------------------------------------------------------------
def _spectral_conv_kernel(wr_ref, wi_ref, bias_ref, r_ref, i_ref, o_ref):
    # wr/wi: (Cout2, Cin)   r/i: (Cin, tn)   bias: (Cout2, 1)   o: (Cout2, tn)
    y = jnp.dot(wr_ref[...], r_ref[...], preferred_element_type=jnp.float32)
    y = y + jnp.dot(wi_ref[...], i_ref[...], preferred_element_type=jnp.float32)
    y = y + bias_ref[...]                       # lane-broadcast of per-channel bias
    o_ref[...] = jnp.maximum(y, 0.0).astype(o_ref.dtype)


def _vmem_budget_bytes():
    """Generation-aware VMEM budget: ~70% of per-core VMEM capacity."""
    try:
        info = pltpu.get_tpu_info()
        cap = getattr(info, "vmem_capacity_bytes", None)
        if cap is None:
            cap = getattr(info, "vmem_bytes", None)
        if cap:
            return int(0.70 * int(cap))
    except Exception:
        pass
    # Conservative fallback: safe on v7x's 64 MiB-per-TC parts.
    return 40 * 1024 * 1024


def _pick_spatial_tile(hwf, batch, c_in, cout2, in_itemsize, out_itemsize,
                       vmem_budget_bytes):
    """Largest lane tile (multiple of 128) covering <= HWf that fits the budget.

    Covers the whole spectral extent in one step when possible; when B == 1 it
    is split so the grid has >= 2 steps (keeps both v7x TensorCores busy).
    """
    full = pl.cdiv(hwf, 128) * 128              # one tile covering all of HWf

    # Double-buffered streaming real+imag inputs + output, per lane of tn.
    per_lane = 2 * (2 * c_in * in_itemsize + cout2 * out_itemsize)
    # Weights + bias (tiny, double-buffered upper bound).
    w_bytes = 2 * (2 * cout2 * c_in * in_itemsize + cout2 * 4)
    headroom = 4 * 1024 * 1024

    avail = max(vmem_budget_bytes - w_bytes - headroom, per_lane * 128)
    tn_fit = max((avail // per_lane) // 128 * 128, 128)
    tn = min(full, tn_fit)

    # v7x: with B == 1 a single-step grid leaves one TensorCore idle.
    if batch == 1 and pl.cdiv(hwf, tn) == 1 and full > 128:
        tn_half = pl.cdiv(pl.cdiv(hwf, 2), 128) * 128
        tn = max(128, min(tn, tn_half))

    return tn, w_bytes


def spectral_conv_bn_relu_pallas(sp_real, sp_imag, w_r, w_i, bias, *,
                                 compute_dtype=jnp.bfloat16,
                                 out_dtype=None,
                                 vmem_budget_bytes=None):
    """sp_real/sp_imag: (B, Cin, HWf); w_r/w_i: (Cout2, Cin); bias: (Cout2,).

    Returns (B, Cout2, HWf) in out_dtype = relu(W_r @ real + W_i @ imag + bias).
    """
    b, c_in, hwf = sp_real.shape
    cout2 = w_r.shape[0]
    if out_dtype is None:
        out_dtype = compute_dtype
    in_itemsize = jnp.dtype(compute_dtype).itemsize
    out_itemsize = jnp.dtype(out_dtype).itemsize

    if vmem_budget_bytes is None:
        vmem_budget_bytes = _vmem_budget_bytes()

    tn, w_bytes = _pick_spatial_tile(hwf, b, c_in, cout2, in_itemsize,
                                     out_itemsize, vmem_budget_bytes)
    n_sp = pl.cdiv(hwf, tn)

    wr = w_r.astype(compute_dtype)
    wi = w_i.astype(compute_dtype)
    bias2d = bias.reshape(cout2, 1).astype(jnp.float32)
    sr = sp_real if sp_real.dtype == compute_dtype else sp_real.astype(compute_dtype)
    si = sp_imag if sp_imag.dtype == compute_dtype else sp_imag.astype(compute_dtype)

    # Explicit VMEM limit: never below actual usage + headroom; stays within
    # the generation-aware budget by construction of tn.
    usage = 2 * tn * (2 * c_in * in_itemsize + cout2 * out_itemsize) + w_bytes
    vmem_limit = int(max(usage + (6 << 20), 32 << 20))

    cost = pl.CostEstimate(
        flops=4 * b * hwf * cout2 * c_in,
        transcendentals=0,
        bytes_accessed=(b * hwf * (2 * c_in * in_itemsize + cout2 * out_itemsize)
                        + 2 * cout2 * c_in * in_itemsize + cout2 * 4),
    )

    return pl.pallas_call(
        _spectral_conv_kernel,
        out_shape=jax.ShapeDtypeStruct((b, cout2, hwf), out_dtype),
        grid_spec=pltpu.PrefetchScalarGridSpec(
            num_scalar_prefetch=0,
            grid=(b, n_sp),
            in_specs=[
                pl.BlockSpec((cout2, c_in), lambda bi, j: (0, 0)),      # W_real (scaled)
                pl.BlockSpec((cout2, c_in), lambda bi, j: (0, 0)),      # W_imag (scaled)
                pl.BlockSpec((cout2, 1), lambda bi, j: (0, 0)),         # folded BN bias
                pl.BlockSpec((None, c_in, tn), lambda bi, j: (bi, 0, j)),  # real slab
                pl.BlockSpec((None, c_in, tn), lambda bi, j: (bi, 0, j)),  # imag slab
            ],
            out_specs=pl.BlockSpec((None, cout2, tn), lambda bi, j: (bi, 0, j)),
        ),
        compiler_params=pltpu.CompilerParams(
            dimension_semantics=("parallel", "parallel"),
            vmem_limit_bytes=vmem_limit,
        ),
        cost_estimate=cost,
    )(wr, wi, bias2d, sr, si)


# ----------------------------------------------------------------------------
# FourierUnit forward (groups=1, no spectral pos encoding, no SE, 2D FFT, ortho)
# ----------------------------------------------------------------------------
def fourier_unit_forward(x, params, *, compute_dtype=jnp.bfloat16):
    """x: (B, Cin, H, W) float32 (NCHW, same as the PyTorch module)."""
    b, c_in, h, w = x.shape
    conv_w = params["conv_w"]          # (2*Cout, 2*Cin, 1, 1), torch channel order
    gamma = params["bn_gamma"]
    beta = params["bn_beta"]
    rmean = params["bn_mean"]
    rvar = params["bn_var"]
    eps = params["bn_eps"]

    cout2 = conv_w.shape[0]
    c_out = cout2 // 2

    # rfftn over (-2, -1), norm='ortho'; keep NCHW (channel-first), flatten H*Wf.
    ffted = jnp.fft.rfft2(x, norm="ortho")               # (B, Cin, H, Wf) complex64
    wf = ffted.shape[-1]
    hwf = h * wf
    # Extract real/imag directly in compute_dtype: one complex->compute fusion,
    # no intermediate f32 slab pass.
    sp_real = ffted.real.astype(compute_dtype).reshape(b, c_in, hwf)
    sp_imag = ffted.imag.astype(compute_dtype).reshape(b, c_in, hwf)

    # --- Fold torch's interleaved (real,imag) channel order + BN scale into W ---
    # torch input  channel 2c   = real(c), 2c+1 = imag(c)
    # torch output channel 2c   = real(c), 2c+1 = imag(c)
    # our output order: [real_0..real_{Cout-1}, imag_0..imag_{Cout-1}]
    wmat = conv_w.reshape(cout2, 2 * c_in).astype(jnp.float32)
    out_perm = jnp.concatenate([2 * jnp.arange(c_out), 2 * jnp.arange(c_out) + 1])
    wmat = wmat[out_perm]                                # rows -> our output order
    inv_std = 1.0 / jnp.sqrt(rvar + eps)
    scale = (gamma * inv_std)[out_perm]                  # per-output-channel BN scale
    bias = (beta - rmean * gamma * inv_std)[out_perm]    # per-output-channel BN bias
    w_r = wmat[:, 0::2] * scale[:, None]                 # columns hitting real inputs
    w_i = wmat[:, 1::2] * scale[:, None]                 # columns hitting imag inputs

    # ---- hot path: 1x1 conv + BN + ReLU fused in the Pallas kernel ----
    y = spectral_conv_bn_relu_pallas(sp_real, sp_imag, w_r, w_i, bias,
                                     compute_dtype=compute_dtype,
                                     out_dtype=compute_dtype)
    # y: (B, 2*Cout, HWf) with channels = [reals | imags]
    y = y.reshape(b, cout2, h, wf)
    y_r = y[:, :c_out].astype(jnp.float32)               # contiguous channel slices
    y_i = y[:, c_out:].astype(jnp.float32)
    y_c = jax.lax.complex(y_r, y_i)

    # irfftn with s = (H, W), norm='ortho' — directly on NCHW, no transposes.
    out = jnp.fft.irfft2(y_c, s=(h, w), norm="ortho")
    return out.astype(x.dtype)


# ----------------------------------------------------------------------------
# Pure-JAX reference following the PyTorch code path literally (for validation)
# ----------------------------------------------------------------------------
def fourier_unit_reference(x, params):
    b, c_in, h, w = x.shape
    conv_w = params["conv_w"]
    gamma, beta = params["bn_gamma"], params["bn_beta"]
    rmean, rvar, eps = params["bn_mean"], params["bn_var"], params["bn_eps"]

    ffted = jnp.fft.rfft2(x, norm="ortho")
    wf = ffted.shape[-1]
    ffted = jnp.stack((ffted.real, ffted.imag), axis=-1)
    ffted = jnp.transpose(ffted, (0, 1, 4, 2, 3)).reshape(b, 2 * c_in, h, wf)

    cout2 = conv_w.shape[0]
    wmat = conv_w.reshape(cout2, 2 * c_in)
    conv = jnp.einsum("oc,bchw->bohw", wmat, ffted)
    inv_std = 1.0 / jnp.sqrt(rvar + eps)
    conv = (conv - rmean[None, :, None, None]) * (gamma * inv_std)[None, :, None, None] \
        + beta[None, :, None, None]
    conv = jnp.maximum(conv, 0.0)

    c_out = cout2 // 2
    y = conv.reshape(b, c_out, 2, h, wf)
    y = jnp.transpose(y, (0, 1, 3, 4, 2))
    y_c = y[..., 0] + 1j * y[..., 1]
    return jnp.fft.irfft2(y_c, s=(h, w), norm="ortho").astype(x.dtype)


# ----------------------------------------------------------------------------
def make_params(key, in_channels, out_channels):
    """Deterministic synthetic parameters (shapes from FourierUnit.__init__)."""
    cin2 = in_channels * 2
    cout2 = out_channels * 2
    conv_w = 0.1 * jax.random.normal(key, (cout2, cin2, 1, 1), dtype=jnp.float32)
    # BatchNorm2d(out_channels*2) params, inference statistics (deterministic).
    ch = jnp.arange(cout2, dtype=jnp.float32)
    bn_gamma = 1.0 + 0.05 * ch
    bn_beta = 0.01 * ch
    bn_mean = 0.02 * (ch - cout2 / 2.0)
    bn_var = 1.0 + 0.1 * ch
    return {
        "conv_w": conv_w,
        "bn_gamma": bn_gamma,
        "bn_beta": bn_beta,
        "bn_mean": bn_mean,
        "bn_var": bn_var,
        "bn_eps": 1e-5,
    }


if __name__ == "__main__":
    B, C, H, W = 2, 4, 16, 16          # in_channels = out_channels = 4
    key = jax.random.PRNGKey(0)
    k_x, k_p = jax.random.split(key)
    x = jax.random.normal(k_x, (B, C, H, W), dtype=jnp.float32)
    params = make_params(k_p, C, C)

    ref = jax.block_until_ready(fourier_unit_reference(x, params))

    # f32 compute/output path (exact match to reference).
    fwd_f32 = jax.jit(functools.partial(fourier_unit_forward,
                                        compute_dtype=jnp.float32))
    out = jax.block_until_ready(fwd_f32(x, params))
    assert out.shape == (B, C, H, W)
    assert jnp.allclose(out, ref, atol=1e-4, rtol=1e-4), "f32 mismatch vs reference"

    # Default bf16 slab/output path (v5e/v6e/v7x fast path): ~half HBM traffic.
    fwd_bf16 = jax.jit(fourier_unit_forward)
    out_bf16 = jax.block_until_ready(fwd_bf16(x, params))
    assert jnp.allclose(out_bf16, ref, atol=5e-2, rtol=5e-2), "bf16 mismatch vs reference"

    print("KERNEL_OK")
</pallas_src>

<mosaic_0001>
module attributes {stable_mosaic.version = 11 : i64} {
  func.func @_spectral_conv_kernel(%arg0: i32, %arg1: i32, %arg2: memref<8x4xf32, #tpu.memory_space<vmem>>, %arg3: memref<8x4xf32, #tpu.memory_space<vmem>>, %arg4: memref<8x1xf32, #tpu.memory_space<vmem>>, %arg5: memref<1x4x256xf32, #tpu.memory_space<vmem>>, %arg6: memref<1x4x256xf32, #tpu.memory_space<vmem>>, %arg7: memref<1x8x256xf32, #tpu.memory_space<vmem>>) attributes {dimension_semantics = [#tpu.dimension_semantics<parallel>, #tpu.dimension_semantics<parallel>], iteration_bounds = array<i64: 2, 1>, scalar_prefetch = 0 : i64, scratch_operands = 0 : i64, tpu.core_type = #tpu.core_type<tc>, window_params = [{pipeline_mode = #tpu.pipeline_mode<synchronous>, transform_indices = @transform_0, window_bounds = array<i64: 8, 4>}, {pipeline_mode = #tpu.pipeline_mode<synchronous>, transform_indices = @transform_1, window_bounds = array<i64: 8, 4>}, {pipeline_mode = #tpu.pipeline_mode<synchronous>, transform_indices = @transform_2, window_bounds = array<i64: 8, 1>}, {transform_indices = @transform_3, window_bounds = array<i64: 1, 4, 256>}, {transform_indices = @transform_4, window_bounds = array<i64: 1, 4, 256>}, {transform_indices = @transform_5, window_bounds = array<i64: 1, 8, 256>}]} {
    %c0 = arith.constant 0 : index
    %c0_0 = arith.constant 0 : index
    %0 = vector.load %arg2[%c0, %c0_0] : memref<8x4xf32, #tpu.memory_space<vmem>>, vector<8x4xf32>
    %c0_1 = arith.constant 0 : index
    %c0_2 = arith.constant 0 : index
    %c0_3 = arith.constant 0 : index
    %1 = vector.load %arg5[%c0_1, %c0_2, %c0_3] : memref<1x4x256xf32, #tpu.memory_space<vmem>>, vector<1x4x256xf32>
    %2 = vector.shape_cast %1 : vector<1x4x256xf32> to vector<4x256xf32>
    %cst = arith.constant dense<0.000000e+00> : vector<8x256xf32>
    %3 = tpu.matmul %0, %2, %cst {dimension_numbers = #tpu.dot_dimension_numbers<[1], [0], [0], [1], [0, 0, 1, 1], [], []>} : vector<8x4xf32>, vector<4x256xf32>, vector<8x256xf32> -> vector<8x256xf32>
    %c0_4 = arith.constant 0 : index
    %c0_5 = arith.constant 0 : index
    %4 = vector.load %arg3[%c0_4, %c0_5] : memref<8x4xf32, #tpu.memory_space<vmem>>, vector<8x4xf32>
    %c0_6 = arith.constant 0 : index
    %c0_7 = arith.constant 0 : index
    %c0_8 = arith.constant 0 : index
    %5 = vector.load %arg6[%c0_6, %c0_7, %c0_8] : memref<1x4x256xf32, #tpu.memory_space<vmem>>, vector<1x4x256xf32>
    %6 = vector.shape_cast %5 : vector<1x4x256xf32> to vector<4x256xf32>
    %cst_9 = arith.constant dense<0.000000e+00> : vector<8x256xf32>
    %7 = tpu.matmul %4, %6, %cst_9 {dimension_numbers = #tpu.dot_dimension_numbers<[1], [0], [0], [1], [0, 0, 1, 1], [], []>} : vector<8x4xf32>, vector<4x256xf32>, vector<8x256xf32> -> vector<8x256xf32>
    %8 = arith.addf %3, %7 : vector<8x256xf32>
    %c0_10 = arith.constant 0 : index
    %c0_11 = arith.constant 0 : index
    %9 = vector.load %arg4[%c0_10, %c0_11] : memref<8x1xf32, #tpu.memory_space<vmem>>, vector<8x1xf32>
    %10 = vector.broadcast %9 : vector<8x1xf32> to vector<8x256xf32>
    %11 = arith.addf %8, %10 : vector<8x256xf32>
    %cst_12 = arith.constant 0.000000e+00 : f32
    %12 = vector.broadcast %cst_12 : f32 to vector<8x256xf32>
    %13 = arith.maximumf %11, %12 : vector<8x256xf32>
    %c0_13 = arith.constant 0 : index
    %c0_14 = arith.constant 0 : index
    %c0_15 = arith.constant 0 : index
    %14 = vector.load %arg7[%c0_13, %c0_14, %c0_15] : memref<1x8x256xf32, #tpu.memory_space<vmem>>, vector<1x8x256xf32>
    %15 = vector.shape_cast %14 : vector<1x8x256xf32> to vector<8x256xf32>
    %16 = vector.shape_cast %13 : vector<8x256xf32> to vector<1x8x256xf32>
    tpu.vector_store %arg7[%c0_13, %c0_14, %c0_15], %16 {strides = array<i32>} : memref<1x8x256xf32, #tpu.memory_space<vmem>>, vector<1x8x256xf32>,
    return
  }
  func.func @transform_0(%arg0: i32, %arg1: i32) -> (i32, i32) {
    %c0_i32 = arith.constant 0 : i32
    %c0_i32_0 = arith.constant 0 : i32
    %c0_i32_1 = arith.constant 0 : i32
    return %c0_i32, %c0_i32_0 : i32, i32
  }
  func.func @transform_1(%arg0: i32, %arg1: i32) -> (i32, i32) {
    %c0_i32 = arith.constant 0 : i32
    %c0_i32_0 = arith.constant 0 : i32
    %c0_i32_1 = arith.constant 0 : i32
    return %c0_i32, %c0_i32_0 : i32, i32
  }
  func.func @transform_2(%arg0: i32, %arg1: i32) -> (i32, i32) {
    %c0_i32 = arith.constant 0 : i32
    %c0_i32_0 = arith.constant 0 : i32
    %c0_i32_1 = arith.constant 0 : i32
    return %c0_i32, %c0_i32_0 : i32, i32
  }
  func.func @transform_3(%arg0: i32, %arg1: i32) -> (i32, i32, i32) {
    %c0_i32 = arith.constant 0 : i32
    %c0_i32_0 = arith.constant 0 : i32
    return %arg0, %c0_i32, %arg1 : i32, i32, i32
  }
  func.func @transform_4(%arg0: i32, %arg1: i32) -> (i32, i32, i32) {
    %c0_i32 = arith.constant 0 : i32
    %c0_i32_0 = arith.constant 0 : i32
    return %arg0, %c0_i32, %arg1 : i32, i32, i32
  }
  func.func @transform_5(%arg0: i32, %arg1: i32) -> (i32, i32, i32) {
    %c0_i32 = arith.constant 0 : i32
    %c0_i32_0 = arith.constant 0 : i32
    return %arg0, %c0_i32, %arg1 : i32, i32, i32
  }
}

</mosaic_0001>

<bundles_post_ra>
// kernel: reverse.0
= control target key start
LH: loop header
LB: loop body
LE: loop exit
PB: predicated region body
PF: predicated region fallthrough
CT: control target
= control target key end

     0   :  { %v71_v3 = vlaneseq  ;;  %v64_v9 = vld [vmem:[#allocation0 + $0x7] ss:$-1 sm:$0xff]  ;;  %v78_v12 = vld [vmem:[#allocation0 + $0x17] ss:$-1 sm:$0xff]  ;;  %s329_s0 = inlined_call_operand.vmem [shape: f32[2,4,16,7], index: 0, kind: input, shape index: {}]   ;;  %s330_s1 = inlined_call_operand.vmem [shape: f32[2,4,16,7], index: 1, kind: output, shape index: {}]  }
   0x1   :  { %v44_v0 = vld [vmem:[%s329_s0] sm:$0xff]  ;;  %v46_v1 = vld [vmem:[%s329_s0 + $0x8] sm:$0xff]  ;;  %v48_v2 = vld [vmem:[%s329_s0 + $0x10] sm:$0xff]  ;;  %v65_v10 = vrot.slane %v64_v9, 1  ;;  %v79_v14 = vrot.slane %v78_v12, 1 }
   0x2   :  { %45 = vst [vmem:[#allocation0 + $0x8] sm:$0xff] %v44_v0  ;;  %47 = vst [vmem:[#allocation0 + $0x18] sm:$0xff] %v46_v1  ;;  %v50_v4 = vld [vmem:[%s329_s0 + $0x18] sm:$0xff]  ;;  %v52_v5 = vld [vmem:[%s329_s0 + $0x20] sm:$0xff]  ;;  %v72_v11 = vshrl.u32 %v71_v3, 7 }
   0x3   :  { %49 = vst [vmem:[#allocation0 + $0x28] sm:$0xff] %v48_v2  ;;  %v54_v6 = vld [vmem:[%s329_s0 + $0x28] sm:$0xff]  ;;  %51 = vst [vmem:[#allocation0 + $0x38] sm:$0xff] %v50_v4  ;;  %v56_v7 = vld [vmem:[%s329_s0 + $0x30] sm:$0xff] }
   0x4   :  { %53 = vst [vmem:[#allocation0 + $0x48] sm:$0xff] %v52_v5  ;;  %55 = vst [vmem:[#allocation0 + $0x58] sm:$0xff] %v54_v6  ;;  %v58_v8 = vld [vmem:[%s329_s0 + $0x38] sm:$0xff]  ;;  %v92_v13 = vld [vmem:[#allocation0 + $0x27] ss:$-1 sm:$0xff]  ;;  %vm73_vm0 = vcmp.lt.s32.totalorder %v72_v11, 7 }
   0x5   :  { %57 = vst [vmem:[#allocation0 + $0x68] sm:$0xff] %v56_v7  ;;  %59 = vst [vmem:[#allocation0 + $0x78] sm:$0xff] %v58_v8  ;;  %v93_v15 = vrot.slane %v92_v13, 1  ;;  %v106_v16 = vld [vmem:[#allocation0 + $0x37] ss:$-1 sm:$0xff] }
   0x6   :  { %66 = vst [vmem:[#allocation1] sm:$0xff] %v65_v10  ;;  %v107_v17 = vrot.slane %v106_v16, 1  ;;  %v120_v18 = vld [vmem:[#allocation0 + $0x47] ss:$-1 sm:$0xff]  ;;  %v134_v19 = vld [vmem:[#allocation0 + $0x57] ss:$-1 sm:$0xff] }
   0x7   :  { %80 = vst [vmem:[#allocation1 + $0x8] sm:$0xff] %v79_v14  ;;  %94 = vst [vmem:[#allocation1 + $0x10] sm:$0xff] %v93_v15  ;;  %v121_v20 = vrot.slane %v120_v18, 1  ;;  %v135_v21 = vrot.slane %v134_v19, 1  ;;  %v148_v22 = vld [vmem:[#allocation0 + $0x67] ss:$-1 sm:$0xff] }
   0x8   :  { %v162_v23 = vld [vmem:[#allocation0 + $0x77] ss:$-1 sm:$0xff]  ;;  %108 = vst [vmem:[#allocation1 + $0x18] sm:$0xff] %v107_v17  ;;  %v149_v24 = vrot.slane %v148_v22, 1 }
   0x9   :  { %v163_v25 = vrot.slane %v162_v23, 1  ;;  %v69_v26 = vld [vmem:[#allocation0 + $0xf] ss:$-1 sm:$0xff]  ;;  %v83_v27 = vld [vmem:[#allocation0 + $0x1f] ss:$-1 sm:$0xff]  ;;  %122 = vst [vmem:[#allocation1 + $0x20] sm:$0xff] %v121_v20 }
   0xa   :  { %v97_v28 = vld [vmem:[#allocation0 + $0x2f] ss:$-1 sm:$0xff]  ;;  %136 = vst [vmem:[#allocation1 + $0x28] sm:$0xff] %v135_v21  ;;  %v70_v29 = vrot.slane %v69_v26, 1  ;;  %v84_v30 = vrot.slane %v83_v27, 1  ;;  %150 = vst [vmem:[#allocation1 + $0x30] sm:$0xff] %v149_v24 }
   0xb   :  { %v98_v31 = vrot.slane %v97_v28, 1  ;;  %v111_v32 = vld [vmem:[#allocation0 + $0x3f] ss:$-1 sm:$0xff]  ;;  %164 = vst [vmem:[#allocation1 + $0x38] sm:$0xff] %v163_v25  ;;  %v125_v34 = vld [vmem:[#allocation0 + $0x4f] ss:$-1 sm:$0xff] }
   0xc   :  { %v112_v33 = vrot.slane %v111_v32, 1  ;;  %v139_v35 = vld [vmem:[#allocation0 + $0x5f] ss:$-1 sm:$0xff]  ;;  %74 = vst.msk [vmem:[#allocation1] sm:$0xff] %vm73_vm0, %v70_v29  ;;  %88 = vst.msk [vmem:[#allocation1 + $0x8] sm:$0xff] %vm73_vm0, %v84_v30  ;;  %v126_v36 = vrot.slane %v125_v34, 1 }
   0xd   :  { %102 = vst.msk [vmem:[#allocation1 + $0x10] sm:$0xff] %vm73_vm0, %v98_v31  ;;  %v140_v37 = vrot.slane %v139_v35, 1  ;;  %v153_v38 = vld [vmem:[#allocation0 + $0x6f] ss:$-1 sm:$0xff]  ;;  %v167_v39 = vld [vmem:[#allocation0 + $0x7f] ss:$-1 sm:$0xff] }
   0xe   :  { %116 = vst.msk [vmem:[#allocation1 + $0x18] sm:$0xff] %vm73_vm0, %v112_v33  ;;  %v154_v40 = vrot.slane %v153_v38, 1  ;;  %v168_v41 = vrot.slane %v167_v39, 1  ;;  %130 = vst.msk [vmem:[#allocation1 + $0x20] sm:$0xff] %vm73_vm0, %v126_v36 }
   0xf   :  { %144 = vst.msk [vmem:[#allocation1 + $0x28] sm:$0xff] %vm73_vm0, %v140_v37 }
  0x10   :  { %158 = vst.msk [vmem:[#allocation1 + $0x30] sm:$0xff] %vm73_vm0, %v154_v40  ;;  %172 = vst.msk [vmem:[#allocation1 + $0x38] sm:$0xff] %vm73_vm0, %v168_v41 }
  0x13   :  { %v214_v42 = vld [vmem:[#allocation1] sm:$0xff]  ;;  %v216_v43 = vld [vmem:[#allocation1 + $0x8] sm:$0xff] }
  0x14   :  { %v218_v44 = vld [vmem:[#allocation1 + $0x10] sm:$0xff]  ;;  %215 = vst [vmem:[%s330_s1] sm:$0xff] %v214_v42  ;;  %217 = vst [vmem:[%s330_s1 + $0x8] sm:$0xff] %v216_v43 }
  0x15   :  { %219 = vst [vmem:[%s330_s1 + $0x10] sm:$0xff] %v218_v44  ;;  %v220_v45 = vld [vmem:[#allocation1 + $0x18] sm:$0xff]  ;;  %v222_v46 = vld [vmem:[#allocation1 + $0x20] sm:$0xff] }
  0x16   :  { %221 = vst [vmem:[%s330_s1 + $0x18] sm:$0xff] %v220_v45  ;;  %v224_v47 = vld [vmem:[#allocation1 + $0x28] sm:$0xff]  ;;  %223 = vst [vmem:[%s330_s1 + $0x20] sm:$0xff] %v222_v46 }
  0x17   :  { %225 = vst [vmem:[%s330_s1 + $0x28] sm:$0xff] %v224_v47  ;;  %v226_v48 = vld [vmem:[#allocation1 + $0x30] sm:$0xff]  ;;  %v228_v49 = vld [vmem:[#allocation1 + $0x38] sm:$0xff] }
  0x18   :  { %227 = vst [vmem:[%s330_s1 + $0x30] sm:$0xff] %v226_v48  ;;  %229 = vst [vmem:[%s330_s1 + $0x38] sm:$0xff] %v228_v49 }

// kernel: fourier_unit_forward.1
= control target key start
LH: loop header
LB: loop body
LE: loop exit
PB: predicated region body
PF: predicated region fallthrough
CT: control target
= control target key end

     0   :  { %s692_s18 = smov 0   ;;  %s694_s19 = smov 0   ;;  %s741_s0 = inlined_call_operand.vmem [shape: f32[8,4], index: 0, kind: input, shape index: {}]   ;;  %s742_s1 = inlined_call_operand.vmem [shape: f32[8,4], index: 1, kind: input, shape index: {}]   ;;  %s743_s2 = inlined_call_operand.vmem [shape: f32[8,1], index: 2, kind: input, shape index: {}]   ;;  %s744_s3 = inlined_call_operand.vmem [shape: f32[2,4,144], index: 3, kind: input, shape index: {}]   ;;  %s745_s4 = inlined_call_operand.vmem [shape: f32[2,4,144], index: 4, kind: input, shape index: {}]   ;;  %s746_s5 = inlined_call_operand.vmem [shape: f32[2,8,144], index: 5, kind: output, shape index: {}]  }
   0x1   :  { %s696_s20 = smov 0  }
   0x2 LB: > { %s27_s21 = sadd.s32 1, %s654_s19  ;;  %p587_p0 = scmp.ge.s32.totalorder %s658_s20, 1  ;;  %s658_s20 = sphi %s696_s20, %s15_s20   ;;  %s654_s19 = sphi %s694_s19, %s748_s19   ;;  %s650_s18 = sphi %s692_s18, %s747_s18  }
   0x3   : > { %p29_p1 = scmp.ge.s32.totalorder %s27_s21, 2  ;;  %p225_p2 = scmp.lt.s32.totalorder %s658_s20, 3 }
   0x5   : > { %s750_s21 = smov (%p29_p1, %s27_s21), 0  ;;  %p226_p3 = pnand %p587_p0, %p225_p2 }
   0x6   : > { %p271_p4 = scmp.lt.s32.totalorder (!%p226_p3), %s650_s18, 1  ;;  %v660_v0 = vmov (!%p226_p3), 0.0   ;;  %v466_v1 = vld [vmem:[%s743_s2] sm:$0xff] (!%p226_p3)  ;;  %v661_v2 = vmov (!%p226_p3), 0   ;;  %vm310_vm0 = vcmask (!%p226_p3), 1043456   ;;  %vm306_vm1 = vcmask (!%p226_p3), 31744  }
   0x7   : > { %229 = sbr.rel (%p226_p3) target bundleno = 243 (0xf3), region = 40  ;;  %379 = vmatprep.mubr.f32.mxu1 (!%p226_p3), %v660_v0  ;;  %459 = vmatprep.mubr.f32.mxu0 (!%p226_p3), %v660_v0  ;;  %v302_v7 = vld [vmem:[%s742_s1] sm:$0xff] (!%p226_p3) }
   0x8   : > { %633 = vset.pattern.permute.xlu0 (!%p226_p3), %v661_v2  ;;  %v300_v8 = vld [vmem:[%s741_s0] sm:$0xff] (!%p226_p3) }
   0x9   : > { %469 = vperm.xlu0 (!%p226_p3), %633, %v466_v1  }
   0xe   : > { %s752_s18 = smov (!%p271_p4, %s650_s18), 1 }
   0xf   : > { %s602_s24 = sshll.u32 %s752_s18, 3  ;;  %s604_s10 = sshll.u32 %s752_s18, 4 }
  0x10   : > { %s288_s27 = scalar_lea.vmem %s745_s4, %s602_s24  ;;  %s278_s30 = scalar_lea.vmem %s744_s3, %s602_s24 }
  0x11   : > { %v303_v3 = vld [vmem:[%s288_s27] sm:$0xff]  ;;  %s298_s13 = scalar_lea.vmem %s746_s5, %s604_s10 }
  0x12   : > { %v301_v4 = vld [vmem:[%s278_s30] sm:$0xff]  ;;  %v305_v5 = vcombine.high %v303_v3, %v303_v3 }
  0x13   : > { %v387_v6 = vcombine.high %v301_v4, %v301_v4 }
  0x14   : > { %594 = vmatprep.subr.msk.mxu1 %vm310_vm0, %v305_v5 }
  0x15   : > { %597 = vmatprep.subr.msk.mxu0 %vm310_vm0, %v387_v6  ;;  %595 = vmatpush1.msk.msra.mxu1 %vm310_vm0, %v303_v3 }
  0x16   : > { %598 = vmatpush1.msk.msra.mxu0 %vm310_vm0, %v301_v4  ;;  %596 = vmatmul.mubr.msk.f32.vlgmr.msra.gmra.mrb[0].mxu1 %vm306_vm1, %v302_v7 }
  0x17   : > { %599 = vmatmul.mubr.msk.f32.vlgmr.msra.gmra.mrb[0].mxu0 %vm306_vm1, %v300_v8 }
  0x88   : > { %v470_v9 = vpop.permute.xlu0 %469 }
  0xe9   : > { %v381_v10 = vpop.f32.mrb[0].mxu1 }
  0xea   : > { %v461_v11 = vpop.f32.mrb[0].mxu0  ;;  %v383_v13 = vpop.f32.mrb[1].mxu1 }
  0xeb   : > { %v462_v12 = vadd.f32 %v461_v11, %v381_v10  ;;  %v463_v14 = vpop.f32.mrb[1].mxu0 }
  0xec   : > { %v464_v15 = vadd.f32 %v463_v14, %v383_v13 }
  0xed   : > { %v472_v16 = vadd.f32 %v470_v9, %v462_v12 }
  0xee   : > { %v473_v17 = vadd.f32 %v470_v9, %v464_v15 }
  0xef   : > { %v474_v18 = vmax.f32 %v472_v16, 0.0 }
  0xf0   : > { %v475_v19 = vmax.f32 %v473_v17, 0.0 }
  0xf1   : > { %476 = vst [vmem:[%s298_s13] sm:$0xff] %v474_v18 }
  0xf2   : > { %477 = vst [vmem:[%s298_s13 + $0x8] sm:$0xff] %v475_v19 }
  0xf3 PF: > { %s15_s20 = sadd.s32 1, %s658_s20   ;;  %s747_s18 = smov %s654_s19 }
  0xf4   : > { %p12_p5 = scmp.ge.s32.totalorder %s15_s20, 4   ;;  %s748_s19 = smov %s750_s21 }
  0xf6   :  { %14 = sbr.rel (!%p12_p5) target bundleno = 2 (0x2), region = 73 }

</bundles_post_ra>
